<compile_context>
chip_gen: v7x
topology: tpu7x:2x2x1
jax: 0.10.0
libtpu: 0.0.40
codegen_flags: <defaults>
</compile_context>

<pallas_src>
import jax
import jax.numpy as jnp
from jax.experimental import pallas as pl
from jax.experimental.pallas import tpu as pltpu

_LN_EPS = 1e-12                       # BertLayerNorm eps
_GATHER_TILE_CAP = 1024               # bound on in-flight row DMAs per grid step


# ----------------------------------------------------------------------------- helpers
def _vmem_limits():
    """(scoped vmem limit, working-set budget) derived from the actual chip."""
    phys = 64 * 1024 * 1024                       # conservative default = v7x per-TC VMEM
    try:
        phys = int(getattr(pltpu.get_tpu_info(), "vmem_capacity_bytes", phys))
    except Exception:
        pass
    limit = min(phys * 7 // 8, phys - (8 << 20))  # leave room for Mosaic internal scratch
    limit = max(limit, 32 << 20)
    budget = max(limit - (16 << 20), limit // 2)  # headroom for spills / pipeline buffers
    return int(limit), int(budget)


def _fused_vocab_threshold():
    """Break-even vocab size for the single-pass one-hot MXU gather vs the HBM DMA floor.

    V* ~= MXU_peak * out_bytes / (2 * HBM_BW)  ->  ~500 (v5e), ~1300 (v6e), ~600 (v7x).
    Staying below it keeps the kernel memory-bound on every generation.
    """
    try:
        kind = jax.devices()[0].device_kind.lower()
    except Exception:
        kind = ""
    if "v6" in kind:
        return 1024
    return 512                                     # v5e / v7x / unknown: conservative


def _pick_tile_s(S, per_row_bytes, fixed_bytes, budget, cap=None):
    """Largest sequence tile fitting the VMEM working-set budget (whole S if possible)."""
    avail = max(budget - fixed_bytes, 2 << 20)
    max_rows = avail // max(per_row_bytes, 1)
    if cap is not None:
        max_rows = min(max_rows, cap)
    if S <= max_rows:
        return S                                   # block == full dim: always legal
    tile = int(max(8, min(max_rows, S)))
    if tile >= 128:
        return (tile // 128) * 128                 # lane/sublane friendly partial tiles
    return (tile // 8) * 8                         # partial blocks need sublane multiples


def _decompose_table_bf16(tbl):
    """Stack of bf16 components whose sum reconstructs the table values.

    bf16 table -> 1 component (DEFAULT-precision bf16 matmul is already exact for a
    0/1 one-hot).  f32 table -> 3 components (hi/mid/lo, the bf16_3x split), so the
    gather stays exact with three single-pass DEFAULT bf16 matmuls instead of the
    six-pass HIGHEST f32 matmul.
    """
    if tbl.dtype == jnp.bfloat16:
        return tbl[None]
    t = tbl.astype(jnp.float32)
    hi = t.astype(jnp.bfloat16)
    r1 = t - hi.astype(jnp.float32)
    mid = r1.astype(jnp.bfloat16)
    lo = (r1 - mid.astype(jnp.float32)).astype(jnp.bfloat16)
    return jnp.stack([hi, mid, lo], axis=0)        # (3, V, H)


def _layernorm(x, gamma, beta):
    """LayerNorm over the last axis in f32 (BertLayerNorm, eps=1e-12)."""
    mean = jnp.mean(x, axis=-1, keepdims=True)
    xc = x - mean
    var = jnp.mean(xc * xc, axis=-1, keepdims=True)
    inv = jax.lax.rsqrt(var + _LN_EPS)
    return xc * (inv * gamma) + beta


# ----------------------------------------------------------------------------- kernels
def _fused_gather_ln_kernel(ids_ref, pos_ref, word_ref, gamma_ref, beta_ref, o_ref):
    """One-hot MXU gather + position add + LayerNorm for one (1, tile_s, H) block.

    word_ref holds (n_comp, V, H) bf16 table components resident in VMEM.
    """
    ids = ids_ref[0]                                              # (tile_s, 1) int32
    tile_s = ids.shape[0]
    n_comp, v, _ = word_ref.shape
    # bf16 one-hot: exact 0/1, half the VMEM temp / MXU ingest of an f32 one-hot.
    oh = (ids == jax.lax.broadcasted_iota(jnp.int32, (tile_s, v), 1)).astype(jnp.bfloat16)
    # Exact gather: each component is a single DEFAULT-precision bf16 MXU pass with f32
    # accumulation; summing hi+mid+lo in f32 reconstructs the f32 table rows.
    gccre = jnp.dot(oh, word_ref[0], preferred_element_type=jnp.float32)
    for c in range(1, n_comp):                                    # static: 1 or 3 passes
        gccre = gccre + jnp.dot(oh, word_ref[c], preferred_element_type=jnp.float32)
    x = pos_ref[...].astype(jnp.float32) + gccre
    y = _layernorm(x, gamma_ref[...].astype(jnp.float32),
                   beta_ref[...].astype(jnp.float32))
    o_ref[0] = y.astype(o_ref.dtype)


def _dma_gather_ln_kernel(ids_ref, pos_ref, word_hbm, gamma_ref, beta_ref, o_ref,
                          gbuf, sem):
    """Large-vocab path: per-row DMA gather from HBM + position add + LayerNorm.

    ids_ref: (B, S) int32 in SMEM (scalar prefetch).  word_hbm stays in HBM (pl.ANY).
    All row copies for the tile are issued back-to-back (many in flight), then drained.
    """
    s_idx = pl.program_id(0)
    b = pl.program_id(1)
    tile_s, _ = gbuf.shape
    S_total = ids_ref.shape[1]
    base = s_idx * tile_s

    def issue(t, carry):
        seq = jnp.minimum(base + t, S_total - 1)      # clamp ragged tail (rows discarded)
        tok = ids_ref[b, seq]
        pltpu.make_async_copy(word_hbm.at[pl.ds(tok, 1), :],
                              gbuf.at[pl.ds(t, 1), :], sem).start()
        return carry
    jax.lax.fori_loop(0, tile_s, issue, 0)

    def drain(t, carry):
        # Same-sized dummy descriptor: each wait retires one row's worth of bytes.
        pltpu.make_async_copy(word_hbm.at[pl.ds(0, 1), :],
                              gbuf.at[pl.ds(t, 1), :], sem).wait()
        return carry
    jax.lax.fori_loop(0, tile_s, drain, 0)

    x = pos_ref[...].astype(jnp.float32) + gbuf[...].astype(jnp.float32)
    y = _layernorm(x, gamma_ref[...].astype(jnp.float32),
                   beta_ref[...].astype(jnp.float32))
    o_ref[0] = y.astype(o_ref.dtype)


# ----------------------------------------------------------------------------- wrapper
def gccre_position_embed_forward(input_ids, params, *, tile_s=None,
                                 out_dtype=jnp.float32, fuse_gather=None):
    """Forward pass of GccrePositionEmbedder.

    input_ids: (B, S) integer token ids.
    params: dict with
        'pos_table'  (P, H) position-embedding table (P >= S),
        'word_table' (V, H) token-embedding table (stands in for GccreEmbedding),
        'ln_gamma'   (H,), 'ln_beta' (H,) LayerNorm affine parameters.
    Returns (embeddings (B, S, H) out_dtype, gccre_cls_loss scalar float32).
    out_dtype=jnp.bfloat16 halves the output HBM stream (LN math stays f32 in-kernel).
    """
    B, S = input_ids.shape
    pos_table = params["pos_table"]
    word_table = params["word_table"]
    P, H = pos_table.shape
    V = word_table.shape[0]
    assert P >= S, "sequence length exceeds max_position_embeddings"

    vmem_limit, vmem_budget = _vmem_limits()
    pos_it = jnp.dtype(pos_table.dtype).itemsize
    out_it = jnp.dtype(out_dtype).itemsize
    tbl_it = jnp.dtype(word_table.dtype).itemsize

    n_comp = 1 if word_table.dtype == jnp.bfloat16 else 3
    if fuse_gather is None:
        fuse_gather = (V * n_comp <= _fused_vocab_threshold()
                       and 2 * n_comp * V * H * 2 <= vmem_budget // 4)

    gamma2 = params["ln_gamma"].reshape(1, H)
    beta2 = params["ln_beta"].reshape(1, H)
    pos_s = pos_table[:S]                          # (S, H): no (B,S,H) broadcast in HBM
    gccre_cls_loss = jnp.float32(0.0)  # TODO(synk): real GccreEmbedding cls loss unavailable.

    out_shape = jax.ShapeDtypeStruct((B, S, H), out_dtype)
    compiler_params = pltpu.CompilerParams(
        dimension_semantics=("parallel", "arbitrary"),
        vmem_limit_bytes=vmem_limit)

    # Working-set accounting (bytes per sequence row + fixed residents), incl. double
    # buffering of streamed operands and the f32 LN temps inside the kernel.
    if fuse_gather:
        per_row = (2 * 4                    # ids stream (int32, double-buffered)
                   + 2 * H * pos_it         # position rows (double-buffered)
                   + 2 * H * out_it         # output tile (double-buffered)
                   + 2 * V                  # bf16 one-hot row
                   + 4 * H * 4)             # f32 temps (gccre, x, xc, y)
        fixed = 2 * n_comp * V * H * 2 + 4 * H * 4   # resident table comps (x2 buffers)
    else:
        per_row = (2 * H * pos_it + 2 * H * out_it
                   + H * tbl_it             # gather scratch row
                   + 4 * H * 4)
        fixed = 4 * H * 4
    if tile_s is None:
        cap = None if fuse_gather else _GATHER_TILE_CAP
        tile_s = _pick_tile_s(S, per_row, fixed, vmem_budget, cap=cap)
    tile_s = min(int(tile_s), S)
    if tile_s < S:
        tile_s = max(8, (tile_s // 8) * 8)

    grid = (pl.cdiv(S, tile_s), B)                 # batch innermost -> pos tile re-used
    out_spec = pl.BlockSpec((1, tile_s, H), lambda s, b: (b, s, 0))
    gb_spec = pl.BlockSpec((1, H), lambda s, b: (0, 0))
    gb_spec_p = pl.BlockSpec((1, H), lambda s, b, ids: (0, 0))

    if fuse_gather:
        word_stack = _decompose_table_bf16(word_table)       # (n_comp, V, H) bf16
        ids3 = input_ids.astype(jnp.int32).reshape(B, S, 1)
        out = pl.pallas_call(
            _fused_gather_ln_kernel,
            out_shape=out_shape,
            grid_spec=pltpu.PrefetchScalarGridSpec(
                num_scalar_prefetch=0,
                grid=grid,
                in_specs=[
                    pl.BlockSpec((1, tile_s, 1), lambda s, b: (b, s, 0)),    # token ids
                    pl.BlockSpec((tile_s, H), lambda s, b: (s, 0)),          # pos rows
                    pl.BlockSpec((n_comp, V, H), lambda s, b: (0, 0, 0)),    # table comps
                    gb_spec,                                                 # gamma
                    gb_spec,                                                 # beta
                ],
                out_specs=out_spec),
            compiler_params=compiler_params,
        )(ids3, pos_s, word_stack, gamma2, beta2)
    else:
        # In-kernel DMA gather: ids in SMEM (scalar prefetch), table stays in HBM; no
        # (B,S,H) XLA-gather intermediate is written/re-read.
        ids_i32 = input_ids.astype(jnp.int32)
        out = pl.pallas_call(
            _dma_gather_ln_kernel,
            out_shape=out_shape,
            grid_spec=pltpu.PrefetchScalarGridSpec(
                num_scalar_prefetch=1,
                grid=grid,
                in_specs=[
                    pl.BlockSpec((tile_s, H), lambda s, b, ids: (s, 0)),     # pos rows
                    pl.BlockSpec(memory_space=pl.ANY),                       # table in HBM
                    gb_spec_p,                                               # gamma
                    gb_spec_p,                                               # beta
                ],
                out_specs=pl.BlockSpec((1, tile_s, H), lambda s, b, ids: (b, s, 0)),
                scratch_shapes=[
                    pltpu.VMEM((tile_s, H), word_table.dtype),               # gathered rows
                    pltpu.SemaphoreType.DMA,
                ]),
            compiler_params=compiler_params,
        )(ids_i32, pos_s, word_table, gamma2, beta2)

    # Dropout(eval) == identity.
    return out, gccre_cls_loss


# ----------------------------------------------------------------------------- reference
def _reference(input_ids, params):
    B, S = input_ids.shape
    position_ids = jnp.broadcast_to(jnp.arange(S)[None, :], (B, S))
    pos_emb = params["pos_table"][position_ids]
    gccre_emb = params["word_table"][input_ids]
    x = (pos_emb + gccre_emb).astype(jnp.float32)
    mean = jnp.mean(x, axis=-1, keepdims=True)
    var = jnp.mean((x - mean) ** 2, axis=-1, keepdims=True)
    y = (x - mean) / jnp.sqrt(var + _LN_EPS)
    return y * params["ln_gamma"] + params["ln_beta"]


if __name__ == "__main__":
    # Small config consistent with the module: vocab=64, max_pos=16, hidden=32, B=2, S=8.
    VOCAB, MAX_POS, H = 64, 16, 32
    B, S = 2, 8

    key = jax.random.PRNGKey(0)
    k_pos, k_word, k_gamma, k_ids, k_ids2 = jax.random.split(key, 5)

    params = {
        "pos_table": jax.random.normal(k_pos, (MAX_POS, H), dtype=jnp.float32) * 0.02,
        "word_table": jax.random.normal(k_word, (VOCAB, H), dtype=jnp.float32) * 0.02,
        "ln_gamma": 1.0 + 0.1 * jax.random.normal(k_gamma, (H,), dtype=jnp.float32),
        "ln_beta": jnp.zeros((H,), dtype=jnp.float32),
    }
    input_ids = jax.random.randint(k_ids, (B, S), 0, VOCAB, dtype=jnp.int32)
    ref = _reference(input_ids, params)

    # Fused small-vocab path (bf16 component matmuls, exact gather).
    emb_fused, cls_loss = gccre_position_embed_forward(input_ids, params)
    emb_fused = jax.block_until_ready(emb_fused)
    assert emb_fused.shape == (B, S, H)
    assert cls_loss.shape == ()
    assert jnp.allclose(emb_fused, ref, atol=1e-5, rtol=1e-5), "fused path mismatch"

    # Large-vocab path: in-kernel DMA row gather + fused add + LayerNorm.
    emb_dma, _ = gccre_position_embed_forward(input_ids, params, fuse_gather=False)
    emb_dma = jax.block_until_ready(emb_dma)
    assert jnp.allclose(emb_dma, ref, atol=1e-5, rtol=1e-5), "DMA-gather path mismatch"

    # bf16 output (halves the dominant HBM write stream; LN math stays f32).
    emb_bf16, _ = gccre_position_embed_forward(input_ids, params, out_dtype=jnp.bfloat16)
    emb_bf16 = jax.block_until_ready(emb_bf16)
    assert jnp.allclose(emb_bf16.astype(jnp.float32), ref, atol=3e-2, rtol=3e-2), \
        "bf16-output path mismatch"

    # Ragged tail: S not divisible by tile_s exercises partial-block masking and the
    # sequence-index clamp in the DMA-gather path.
    S2 = 12
    ids2 = jax.random.randint(k_ids2, (B, S2), 0, VOCAB, dtype=jnp.int32)
    ref2 = _reference(ids2, params)
    for fg in (True, False):
        e2, _ = gccre_position_embed_forward(ids2, params, tile_s=8, fuse_gather=fg)
        e2 = jax.block_until_ready(e2)
        assert jnp.allclose(e2, ref2, atol=1e-5, rtol=1e-5), f"ragged mismatch (fuse={fg})"

    print("KERNEL_OK")
</pallas_src>

<mosaic_0001>
module attributes {stable_mosaic.version = 11 : i64} {
  func.func @_fused_gather_ln_kernel(%arg0: i32, %arg1: i32, %arg2: memref<1x8x1xi32, #tpu.memory_space<vmem>>, %arg3: memref<8x32xf32, #tpu.memory_space<vmem>>, %arg4: memref<3x64x32xbf16, #tpu.memory_space<vmem>>, %arg5: memref<1x32xf32, #tpu.memory_space<vmem>>, %arg6: memref<1x32xf32, #tpu.memory_space<vmem>>, %arg7: memref<1x8x32xf32, #tpu.memory_space<vmem>>) attributes {dimension_semantics = [#tpu.dimension_semantics<parallel>, #tpu.dimension_semantics<arbitrary>], iteration_bounds = array<i64: 1, 2>, scalar_prefetch = 0 : i64, scratch_operands = 0 : i64, tpu.core_type = #tpu.core_type<tc>, window_params = [{transform_indices = @transform_0, window_bounds = array<i64: 1, 8, 1>}, {transform_indices = @transform_1, window_bounds = array<i64: 8, 32>}, {pipeline_mode = #tpu.pipeline_mode<synchronous>, transform_indices = @transform_2, window_bounds = array<i64: 3, 64, 32>}, {pipeline_mode = #tpu.pipeline_mode<synchronous>, transform_indices = @transform_3, window_bounds = array<i64: 1, 32>}, {pipeline_mode = #tpu.pipeline_mode<synchronous>, transform_indices = @transform_4, window_bounds = array<i64: 1, 32>}, {transform_indices = @transform_5, window_bounds = array<i64: 1, 8, 32>}]} {
    %c0 = arith.constant 0 : index
    %c0_0 = arith.constant 0 : index
    %c0_1 = arith.constant 0 : index
    %0 = vector.load %arg2[%c0, %c0_0, %c0_1] : memref<1x8x1xi32, #tpu.memory_space<vmem>>, vector<1x8x1xi32>
    %1 = vector.shape_cast %0 : vector<1x8x1xi32> to vector<8x1xi32>
    %2 = tpu.iota {dimensions = array<i32: 1>} : vector<8x64xi32>
    %3 = vector.broadcast %1 : vector<8x1xi32> to vector<8x64xi32>
    %4 = arith.cmpi eq, %3, %2 : vector<8x64xi32>
    %5 = arith.extui %4 : vector<8x64xi1> to vector<8x64xi32>
    %6 = arith.sitofp %5 : vector<8x64xi32> to vector<8x64xf32>
    %7 = arith.truncf %6 : vector<8x64xf32> to vector<8x64xbf16>
    %c0_2 = arith.constant 0 : index
    %c0_3 = arith.constant 0 : index
    %c0_4 = arith.constant 0 : index
    %8 = vector.load %arg4[%c0_2, %c0_3, %c0_4] : memref<3x64x32xbf16, #tpu.memory_space<vmem>>, vector<1x64x32xbf16>
    %9 = vector.shape_cast %8 : vector<1x64x32xbf16> to vector<64x32xbf16>
    %cst = arith.constant dense<0.000000e+00> : vector<8x32xf32>
    %10 = tpu.matmul %7, %9, %cst {dimension_numbers = #tpu.dot_dimension_numbers<[1], [0], [0], [1], [0, 0, 1, 1], [], []>} : vector<8x64xbf16>, vector<64x32xbf16>, vector<8x32xf32> -> vector<8x32xf32>
    %c1 = arith.constant 1 : index
    %c0_5 = arith.constant 0 : index
    %c0_6 = arith.constant 0 : index
    %11 = vector.load %arg4[%c1, %c0_5, %c0_6] : memref<3x64x32xbf16, #tpu.memory_space<vmem>>, vector<1x64x32xbf16>
    %12 = vector.shape_cast %11 : vector<1x64x32xbf16> to vector<64x32xbf16>
    %cst_7 = arith.constant dense<0.000000e+00> : vector<8x32xf32>
    %13 = tpu.matmul %7, %12, %cst_7 {dimension_numbers = #tpu.dot_dimension_numbers<[1], [0], [0], [1], [0, 0, 1, 1], [], []>} : vector<8x64xbf16>, vector<64x32xbf16>, vector<8x32xf32> -> vector<8x32xf32>
    %14 = arith.addf %10, %13 : vector<8x32xf32>
    %c2 = arith.constant 2 : index
    %c0_8 = arith.constant 0 : index
    %c0_9 = arith.constant 0 : index
    %15 = vector.load %arg4[%c2, %c0_8, %c0_9] : memref<3x64x32xbf16, #tpu.memory_space<vmem>>, vector<1x64x32xbf16>
    %16 = vector.shape_cast %15 : vector<1x64x32xbf16> to vector<64x32xbf16>
    %cst_10 = arith.constant dense<0.000000e+00> : vector<8x32xf32>
    %17 = tpu.matmul %7, %16, %cst_10 {dimension_numbers = #tpu.dot_dimension_numbers<[1], [0], [0], [1], [0, 0, 1, 1], [], []>} : vector<8x64xbf16>, vector<64x32xbf16>, vector<8x32xf32> -> vector<8x32xf32>
    %18 = arith.addf %14, %17 : vector<8x32xf32>
    %c0_11 = arith.constant 0 : index
    %c0_12 = arith.constant 0 : index
    %19 = vector.load %arg3[%c0_11, %c0_12] : memref<8x32xf32, #tpu.memory_space<vmem>>, vector<8x32xf32>
    %20 = arith.addf %19, %18 : vector<8x32xf32>
    %c0_13 = arith.constant 0 : index
    %c0_14 = arith.constant 0 : index
    %21 = vector.load %arg5[%c0_13, %c0_14] : memref<1x32xf32, #tpu.memory_space<vmem>>, vector<1x32xf32>
    %c0_15 = arith.constant 0 : index
    %c0_16 = arith.constant 0 : index
    %22 = vector.load %arg6[%c0_15, %c0_16] : memref<1x32xf32, #tpu.memory_space<vmem>>, vector<1x32xf32>
    %cst_17 = arith.constant dense<0.000000e+00> : vector<8xf32>
    %23 = vector.multi_reduction <add>, %20, %cst_17 [1] : vector<8x32xf32> to vector<8xf32>
    %24 = vector.shape_cast %23 : vector<8xf32> to vector<8x1xf32>
    %cst_18 = arith.constant 3.200000e+01 : f32
    %25 = vector.broadcast %cst_18 : f32 to vector<8x1xf32>
    %26 = arith.divf %24, %25 : vector<8x1xf32>
    %27 = vector.broadcast %26 : vector<8x1xf32> to vector<8x32xf32>
    %28 = arith.subf %20, %27 : vector<8x32xf32>
    %29 = arith.mulf %28, %28 : vector<8x32xf32>
    %cst_19 = arith.constant dense<0.000000e+00> : vector<8xf32>
    %30 = vector.multi_reduction <add>, %29, %cst_19 [1] : vector<8x32xf32> to vector<8xf32>
    %31 = vector.shape_cast %30 : vector<8xf32> to vector<8x1xf32>
    %cst_20 = arith.constant 3.200000e+01 : f32
    %32 = vector.broadcast %cst_20 : f32 to vector<8x1xf32>
    %33 = arith.divf %31, %32 : vector<8x1xf32>
    %cst_21 = arith.constant 9.99999996E-13 : f32
    %34 = vector.broadcast %cst_21 : f32 to vector<8x1xf32>
    %35 = arith.addf %33, %34 : vector<8x1xf32>
    %36 = math.rsqrt %35 : vector<8x1xf32>
    %37 = vector.broadcast %36 : vector<8x1xf32> to vector<8x32xf32>
    %38 = vector.broadcast %21 : vector<1x32xf32> to vector<8x32xf32>
    %39 = arith.mulf %37, %38 : vector<8x32xf32>
    %40 = arith.mulf %28, %39 : vector<8x32xf32>
    %41 = vector.broadcast %22 : vector<1x32xf32> to vector<8x32xf32>
    %42 = arith.addf %40, %41 : vector<8x32xf32>
    %c0_22 = arith.constant 0 : index
    %c0_23 = arith.constant 0 : index
    %c0_24 = arith.constant 0 : index
    %43 = vector.load %arg7[%c0_22, %c0_23, %c0_24] : memref<1x8x32xf32, #tpu.memory_space<vmem>>, vector<1x8x32xf32>
    %44 = vector.shape_cast %43 : vector<1x8x32xf32> to vector<8x32xf32>
    %45 = vector.shape_cast %42 : vector<8x32xf32> to vector<1x8x32xf32>
    tpu.vector_store %arg7[%c0_22, %c0_23, %c0_24], %45 {strides = array<i32>} : memref<1x8x32xf32, #tpu.memory_space<vmem>>, vector<1x8x32xf32>,
    return
  }
  func.func @transform_0(%arg0: i32, %arg1: i32) -> (i32, i32, i32) {
    %c0_i32 = arith.constant 0 : i32
    %c0_i32_0 = arith.constant 0 : i32
    return %arg1, %arg0, %c0_i32 : i32, i32, i32
  }
  func.func @transform_1(%arg0: i32, %arg1: i32) -> (i32, i32) {
    %c0_i32 = arith.constant 0 : i32
    %c0_i32_0 = arith.constant 0 : i32
    return %arg0, %c0_i32 : i32, i32
  }
  func.func @transform_2(%arg0: i32, %arg1: i32) -> (i32, i32, i32) {
    %c0_i32 = arith.constant 0 : i32
    %c0_i32_0 = arith.constant 0 : i32
    %c0_i32_1 = arith.constant 0 : i32
    %c0_i32_2 = arith.constant 0 : i32
    return %c0_i32, %c0_i32_0, %c0_i32_1 : i32, i32, i32
  }
  func.func @transform_3(%arg0: i32, %arg1: i32) -> (i32, i32) {
    %c0_i32 = arith.constant 0 : i32
    %c0_i32_0 = arith.constant 0 : i32
    %c0_i32_1 = arith.constant 0 : i32
    return %c0_i32, %c0_i32_0 : i32, i32
  }
  func.func @transform_4(%arg0: i32, %arg1: i32) -> (i32, i32) {
    %c0_i32 = arith.constant 0 : i32
    %c0_i32_0 = arith.constant 0 : i32
    %c0_i32_1 = arith.constant 0 : i32
    return %c0_i32, %c0_i32_0 : i32, i32
  }
  func.func @transform_5(%arg0: i32, %arg1: i32) -> (i32, i32, i32) {
    %c0_i32 = arith.constant 0 : i32
    %c0_i32_0 = arith.constant 0 : i32
    return %arg1, %arg0, %c0_i32 : i32, i32, i32
  }
}

</mosaic_0001>

<bundles_post_ra>
// kernel: tpu_custom_call.1
= control target key start
LH: loop header
LB: loop body
LE: loop exit
PB: predicated region body
PF: predicated region fallthrough
CT: control target
= control target key end

     0   :  { %10 = vsyncpa [#allocation3], 0  ;;  %s1081_s0 = inlined_call_operand.vmem [shape: s32[2,8,1], index: 0, kind: input, shape index: {}]   ;;  %s1082_s1 = inlined_call_operand.vmem [shape: f32[8,32], index: 1, kind: input, shape index: {}]   ;;  %s1083_s2 = inlined_call_operand.vmem [shape: bf16[3,64,32], index: 2, kind: input, shape index: {}]   ;;  %s1084_s3 = inlined_call_operand.vmem [shape: f32[1,32], index: 3, kind: input, shape index: {}]   ;;  %s1085_s4 = inlined_call_operand.vmem [shape: f32[1,32], index: 4, kind: input, shape index: {}]   ;;  %s1086_s5 = inlined_call_operand.hbm [shape: f32[2,8,32], index: 5, kind: output, shape index: {}]  }
   0x1   :  { %12 = vsyncpa [#allocation3 + $0x1], 0  ;;  %s915_s18 = smov 0   ;;  %s917_s19 = smov 0  }
   0x2   :  { %s919_s20 = smov 0   ;;  %s921_s21 = smov 0  }
   0x3   :  { %s923_s22 = smov 0   ;;  %s925_s23 = smov 0  }
   0x4 LB: > { %s631_s24 = sadd.s32 4294967295, %s879_s23   ;;  %s632_s25 = sadd.s32 4294967294, %s879_s23   ;;  %s879_s23 = sphi %s925_s23, %s18_s23   ;;  %s875_s22 = sphi %s923_s22, %s1093_s22   ;;  %s871_s21 = sphi %s921_s21, %s1092_s21   ;;  %s867_s20 = sphi %s919_s20, %s1091_s20   ;;  %s863_s19 = sphi %s917_s19, %s1090_s19   ;;  %s859_s18 = sphi %s915_s18, %s1089_s18  }
   0x5   : > { %s27_s26 = sadd.s32 1, %s875_s22  ;;  %s156_s27 = sadd.s32 1, %s867_s20 }
   0x6   : > { %p28_p0 = scmp.ge.s32.totalorder %s27_s26, 2  ;;  %p166_p1 = scmp.ne.s32.totalorder %s867_s20, %s863_s19 }
   0x7   : > { %p167_p2 = scmp.eq.s32.totalorder %s631_s24, 1  ;;  %p172_p3 = scmp.ne.s32.totalorder %s863_s19, %s859_s18 }
   0x8   : > { %s1095_s26 = smov (%p28_p0, %s27_s26), 0  ;;  %p173_p5 = scmp.eq.s32.totalorder %s632_s25, 1 }
   0x9   : > { %p955_p4 = por %p167_p2, %p166_p1  ;;  %s151_s29 = ssub.s32 %s875_s22, %s1095_s26 }
   0xa   : > { %p636_p6 = scmp.ge.s32.totalorder %s879_s23, 1  ;;  %p154_p7 = scmp.eq.s32.totalorder %s151_s29, 0 }
   0xb   : > { %p962_p8 = por %p173_p5, %p172_p3  ;;  %p217_p9 = scmp.lt.s32.totalorder %s879_s23, 3 }
   0xc   : > { %s968_s6 = scalar_select %p154_p7, %s867_s20, %s156_s27  }
   0xd   : > { %p218_p10 = pnand %p636_p6, %p217_p9 }
   0xe   : > { %p251_p11 = scmp.lt.s32.totalorder (!%p218_p10), %s871_s21, 1  ;;  %v787_v0 = vld [vmem:[%s1083_s2 + $0x20] sm:$0xff] (!%p218_p10)   ;;  %v881_v1 = vmov (!%p218_p10), 0   ;;  %v882_v2 = vmov (!%p218_p10), 0.0   ;;  %v789_v4 = vld [vmem:[%s1083_s2 + $0x28] sm:$0xff] (!%p218_p10)   ;;  %v791_v7 = vld [vmem:[%s1083_s2 + $0x30] sm:$0xff] (!%p218_p10)   ;;  %v264_v11 = vlaneseq (!%p218_p10) }
   0xf   : > { %221 = sbr.rel (%p218_p10) target bundleno = 718 (0x2ce), region = 40  ;;  %786 = vset.pattern.permute.xlu0 (!%p218_p10), %v881_v1  ;;  %692 = vmatprep.subr.bf16.mxu0 (!%p218_p10), %v882_v2  ;;  %v788_v3 = vld [vmem:[%s1083_s2] sm:$0xff] (!%p218_p10)   ;;  %v790_v5 = vld [vmem:[%s1083_s2 + $0x8] sm:$0xff] (!%p218_p10)   ;;  %v792_v8 = vld [vmem:[%s1083_s2 + $0x10] sm:$0xff] (!%p218_p10)   ;;  %vm883_vm0 = vmmov (!%p218_p10), 0   ;;  %vm314_vm2 = vcmask (!%p218_p10), 523264  }
  0x10   : > { %693 = vmatpush3.bf16.msra.mxu0 (!%p218_p10), %v787_v0  ;;  %704 = vmatprep.subr.bf16.mxu1 (!%p218_p10), %v882_v2  ;;  %v793_v9 = vld [vmem:[%s1083_s2 + $0x38] sm:$0xff] (!%p218_p10)   ;;  %v265_v12 = vand.u32 (!%p218_p10), 127, %v264_v11  ;;  %v795_v15 = vld [vmem:[%s1083_s2 + $0x40] sm:$0xff] (!%p218_p10)   ;;  %v796_v17 = vld [vmem:[%s1083_s2 + $0x48] sm:$0xff] (!%p218_p10)   ;;  %vm500_vm3 = vcmask (!%p218_p10), 261120   ;;  %s248_s8 = sand.u32 (!%p218_p10), 1, %s863_s19  }
  0x11   : > { %694 = vmatprep.subr.bf16.mxu0 (!%p218_p10), %v882_v2  ;;  %705 = vmatpush3.bf16.msra.mxu1 (!%p218_p10), %v788_v3  ;;  %v794_v10 = vld [vmem:[%s1083_s2 + $0x18] sm:$0xff] (!%p218_p10)   ;;  %v797_v18 = vld [vmem:[%s1083_s2 + $0x50] sm:$0xff] (!%p218_p10)   ;;  %v496_v30 = vld [vmem:[%s1082_s1] sm:$0xff] (!%p218_p10)  ;;  %s531_s27 = scalar_lea.sflag (!%p218_p10), [#allocation3], %s248_s8 }
  0x12   : > { %706 = vmatprep.subr.bf16.mxu1 (!%p218_p10), %v882_v2  ;;  %700 = vmatprep.mubr.msk.bf16.mxu0 (!%p218_p10), %vm883_vm0, %v882_v2  ;;  %v798_v19 = vld [vmem:[%s1083_s2 + $0x58] sm:$0xff] (!%p218_p10)   ;;  %v671_v45 = vld [vmem:[%s1084_s3] ss:$0 sm:$0xff] (!%p218_p10) }
  0x13   : > { %712 = vmatprep.mubr.msk.bf16.mxu1 (!%p218_p10), %vm883_vm0, %v882_v2  ;;  %v672_v48 = vld [vmem:[%s1085_s4] ss:$0 sm:$0xff] (!%p218_p10) }
  0x14   : > { %695 = vmatpush3.bf16.msra.mxu0 (!%p218_p10), %v789_v4 }
  0x15   : > { %696 = vmatprep.subr.bf16.mxu0 (!%p218_p10), %v882_v2  ;;  %707 = vmatpush3.bf16.msra.mxu1 (!%p218_p10), %v790_v5 }
  0x16   : > { %s252_s9 = scalar_select %p251_p11, %s871_s21, 1  ;;  %708 = vmatprep.subr.bf16.mxu1 %v882_v2 }
  0x18   : > { %s638_s14 = sshll.u32 %s252_s9, 3  ;;  %697 = vmatpush3.bf16.msra.mxu0 %v791_v7  ;;  %s637_s9 = sshll.u32 %s248_s8, 3 }
  0x19   : > { %s257_s25 = scalar_lea.vmem %s1081_s0, %s638_s14  ;;  %698 = vmatprep.subr.bf16.mxu0 %v882_v2  ;;  %709 = vmatpush3.bf16.msra.mxu1 %v792_v8  ;;  %s674_s14 = sshll.u32 %s871_s21, 7 }
  0x1a   : > { %v263_v6 = vld [vmem:[%s257_s25] sm:$0xff]  ;;  %710 = vmatprep.subr.bf16.mxu1 %v882_v2  ;;  %s250_s15 = scalar_lea.vmem [#allocation2], %s637_s9  ;;  %s1033_s25 = scalar_lea.hbm %s1086_s5, %s674_s14 }
  0x1b   : > { %267 = vperm.xlu0 %786, %v263_v6   ;;  %s545_s16 = sshll.u32 %s250_s15, 4  ;;  %s884_s21 = smov [#allocation2]   ;;  %s1035_s16 = int_to_ptr.vmem [resolvable:$true] %s545_s16 }
  0x1c   : > { %699 = vmatpush3.bf16.msra.mxu0 %v793_v9  ;;  %s801_s29 = scalar_lea.vmem %s1035_s16, 128  ;;  %s805_s7 = sshll.u32 %s884_s21, 4  ;;  %s806_s7 = int_to_ptr.vmem [resolvable:$false] %s805_s7 }
  0x1d   : > { %716 = vmatprep.subr.bf16.mxu0 %v882_v2  ;;  %711 = vmatpush3.bf16.msra.mxu1 %v794_v10  ;;  %p802_p12 = scmp.ne.s32.totalorder %s1035_s16, %s801_s29  ;;  %s807_s9 = scalar_lea.vmem %s806_s7, 256 }
  0x1e   : > { %p808_p1 = scmp.lt.s32.totalorder %s1035_s16, %s806_s7  ;;  %p809_p2 = scmp.lt.s32.totalorder %s807_s9, %s801_s29 }
  0x1f   : > { %p803_p13 = pnand %p802_p12, %p955_p4 }
  0x20   : > { %p810_p3 = por %p809_p2, %p808_p1 }
  0x21   : > { %p804_p0 = pneg %p803_p13 }
  0x23   : > { %p811_p5 = pnand %p810_p3, %p804_p0 }
  0x9a   : > { %v268_v13 = vpop.permute.xlu0 %267 }
  0x9b   : > { %vm269_vm1 = vcmp.eq.s32.totalorder %v268_v13, %v265_v12 }
  0x9c   : > { %v639_v14 = vsel %vm269_vm1, 1.0, %v882_v2 }
  0x9d   : > { %v272_v16 = vpack.c.bf16 %v639_v14, %v639_v14 }
  0x9f   : > { %701 = vmatmul.mubr.msk.bf16.vlgmr.msra.gmra.mrb[0].mxu0 %vm314_vm2, %v272_v16  ;;  %713 = vmatmul.mubr.msk.bf16.vlgmr.msra.gmra.mrb[0].mxu1 %vm314_vm2, %v272_v16 }
  0xa0   : > { %717 = vmatpush3.bf16.msra.mxu0 %v795_v15  ;;  %724 = vmatprep.mubr.msk.bf16.mxu0 %vm883_vm0, %v882_v2 }
  0xa1   : > { %718 = vmatprep.subr.bf16.mxu0 %v882_v2 }
  0xa4   : > { %719 = vmatpush3.bf16.msra.mxu0 %v796_v17 }
  0xa5   : > { %720 = vmatprep.subr.bf16.mxu0 %v882_v2 }
  0xa8   : > { %721 = vmatpush3.bf16.msra.mxu0 %v797_v18 }
  0xa9   : > { %722 = vmatprep.subr.bf16.mxu0 %v882_v2 }
  0xac   : > { %723 = vmatpush3.bf16.msra.mxu0 %v798_v19 }
  0xaf   : > { %725 = vmatmul.mubr.msk.bf16.vlgmr.msra.gmra.mrb[4].mxu0 %vm314_vm2, %v272_v16 }
 0x172   : > { %v352_v20 = vpop.f32.mrb[0].mxu0  ;;  %v416_v21 = vpop.f32.mrb[0].mxu1 }
 0x173   : > { %v417_v22 = vadd.f32 %v416_v21, %v352_v20  ;;  %v702_v23 = vpop.f32.mrb[1].mxu0  ;;  %v714_v24 = vpop.f32.mrb[1].mxu1 }
 0x174   : > { %v355_v25 = vpop.f32.mrb[2].mxu0  ;;  %v419_v26 = vpop.f32.mrb[2].mxu1 }
 0x175   : > { %v703_v27 = vpop.f32.mrb[3].mxu0  ;;  %v715_v28 = vpop.f32.mrb[3].mxu1 }
 0x182   : > { %v489_v29 = vpop.f32.mrb[4].mxu0 }
 0x183   : > { %v495_v31 = vadd.f32 %v489_v29, %v417_v22  ;;  %v726_v32 = vpop.f32.mrb[5].mxu0 }
 0x184   : > { %v492_v33 = vpop.f32.mrb[6].mxu0 }
 0x185   : > { %v727_v34 = vpop.f32.mrb[7].mxu0  ;;  %v497_v35 = vadd.f32 %v496_v30, %v495_v31 }
 0x187   : > { %v501_v36 = vsel %vm500_vm3, %v497_v35, 0.0 }
 0x188   : > { %502 = vadd.xlane.f32.xlu0 %v501_v36 }
 0x215   : > { %v503_v37 = vpop.xlane.xlu0 %502 }
 0x216   : > { %v505_v38 = vmul.f32 0.03125, %v503_v37 }
 0x218   : > { %v506_v39 = vsub.f32 %v497_v35, %v505_v38 }
 0x21a   : > { %v507_v40 = vmul.f32 %v506_v39, %v506_v39 }
 0x21c   : > { %v508_v41 = vsel %vm500_vm3, %v507_v40, 0.0 }
 0x21d   : > { %509 = vadd.xlane.f32.xlu1 %v508_v41 }
 0x2aa   : > { %v510_v42 = vpop.xlane.xlu1 %509 }
 0x2ab   : > { %v511_v43 = vmul.f32 0.03125, %v510_v42 }
 0x2ad   : > { %v512_v44 = vadd.f32 1e-12, %v511_v43 }
 0x2af   : > { %799 = vrsqrt.f32 %v512_v44 }
 0x2b9   : > { %v800_v46 = vpop.eup %799 }
 0x2ba   : > { %v520_v47 = vmul.f32 %v800_v46, %v671_v45 }
 0x2bc   : > { %v521_v49 = vmul.f32 %v520_v47, %v506_v39 }
 0x2be   : > { %v528_v50 = vadd.f32 %v672_v48, %v521_v49 }
 0x2c0   : > { %529 = vst.msk [vmem:[%s250_s15] sm:$0xff] %vm500_vm3, %v528_v50 }
 0x2c1   : > { %814 = shalt.err (!%p811_p5)
}
 0x2c2   : > { %s815_s8 = scalar_lea.hbm %s1033_s25, 128  ;;  %s819_s12 = scalar_lea.hbm %s1086_s5, 256 }
 0x2c3   : > { %p816_p6 = scmp.ne.s32.totalorder %s1033_s25, %s815_s8  ;;  %p820_p10 = scmp.lt.u32.totalorder %s1033_s25, %s1086_s5 }
 0x2c4   : > { %p821_p11 = scmp.lt.u32.totalorder %s819_s12, %s815_s8  ;;  %p823_p13 = scmp.lt.u32.totalorder %s815_s8, %s1033_s25 }
 0x2c5   : > { %p817_p7 = pnand %p816_p6, %p955_p4 }
 0x2c6   : > { %p822_p12 = por %p821_p11, %p820_p10 }
 0x2c7   : > { %p818_p9 = pneg %p817_p7 }
 0x2c8   : > { %p824_p0 = por %p823_p13, %p822_p12 }
 0x2ca   : > { %p825_p1 = pnand %p824_p0, %p818_p9 }
 0x2cc   : > { %828 = shalt.err (!%p825_p1)
}
 0x2cd   : > { %728 = dma.vmem_to_hbm [thread:$0]  (%p955_p4), %s1035_s16, 128, %s1033_s25, %s531_s27  }
 0x2ce PF: > { %p734_p2 = scmp.ge.s32.totalorder %s879_s23, 2  ;;  %s557_s15 = sand.u32 1, %s859_s18  }
 0x2cf   : > { %s558_s17 = scalar_lea.sflag [#allocation3], %s557_s15 }
 0x2d0   : > { %p731_p3 = pnand %p734_p2, %p962_p8 }
 0x2d2   : > { %854 = dma.done.wait (!%p731_p3), %s558_s17, 128  }
 0x2d3   : > { %856 = vsyncadd (!%p731_p3), %s558_s17, 4294967168  ;;  %s18_s23 = sadd.s32 1, %s879_s23   ;;  %s1089_s18 = smov %s863_s19 }
 0x2d4   : > { %p15_p5 = scmp.ge.s32.totalorder %s18_s23, 4   ;;  %s1090_s19 = smov %s867_s20 }
 0x2d5   : > { %s1091_s20 = smov %s968_s6  ;;  %s1092_s21 = smov %s875_s22 }
 0x2d6   : > { %s1093_s22 = smov %s1095_s26  ;;  %17 = sbr.rel (!%p15_p5) target bundleno = 4 (0x4), region = 80 }
 0x2dd   :  { %563 = vsyncpa [#allocation3], 1 }
 0x2de   :  { %565 = vsyncpa [#allocation3 + $0x1], 1 }

</bundles_post_ra>
